<compile_context>
chip_gen: v7x
topology: tpu7x:2x2x1
jax: 0.10.0
libtpu: 0.0.40
codegen_flags: <defaults>
</compile_context>

<pallas_src>
import functools

import jax
import jax.numpy as jnp
from jax.experimental import pallas as pl
from jax.experimental.pallas import tpu as pltpu

LANE = 128        # batch lives on the 128-wide lane axis
MAX_CHUNK = 512   # max lanes per inner sub-chunk (bounds vreg pressure)


def _round_up(n, m):
    return ((n + m - 1) // m) * m


def _pick_chunk(tb):
    for c in (512, 256, 128):
        if tb % c == 0:
            return c
    return tb  # unreachable: tb is always a multiple of 128


def _make_kernel(tb, chunk):
    """Kernel for one (2, tb) batch tile in the transposed (features, batch) layout."""
    n_chunks = tb // chunk

    def kernel(x_ref, w1_ref, b1_ref, w2_ref, b2_ref, w3_ref, b3_ref, o_ref):
        # x_ref : (2, tb)   input features on sublanes, batch on lanes
        # w1_ref: (32, 2), b1_ref: (32, 1)
        # w2_ref: (32, 32), b2_ref: (32, 1)
        # w3_ref: (2, 32),  b3_ref: (2, 1)
        # o_ref : (2, tb)   class probabilities, lane-dense

        # Hoist weight/bias reads (and the tiny w1 column slices) out of the loop.
        w1c0 = w1_ref[:, 0:1]          # (32, 1)
        w1c1 = w1_ref[:, 1:2]          # (32, 1)
        b1 = b1_ref[...]               # (32, 1)
        w2 = w2_ref[...]               # (32, 32)
        b2 = b2_ref[...]               # (32, 1)
        w3 = w3_ref[...]               # (2, 32)
        b3 = b3_ref[...]               # (2, 1)

        # Fully-unrolled inner chunk loop with static slice starts: keeps the big
        # batch tile (amortized per-step overhead) without spilling h1/h2.
        for c in range(n_chunks):
            start = c * chunk
            xc = x_ref[:, pl.ds(start, chunk)]                    # (2, chunk)

            # fc1 (K=2 contraction): VPU broadcast-FMA, not a degenerate MXU matmul.
            h1 = w1c0 * xc[0:1, :] + w1c1 * xc[1:2, :] + b1       # (32, chunk)
            h1 = jnp.maximum(h1, 0.0)

            # fc2: 32x32 contraction on the MXU, f32 accumulation.
            h2 = jnp.dot(w2, h1, preferred_element_type=jnp.float32) + b2
            h2 = jnp.maximum(h2, 0.0)                             # (32, chunk)

            # fc3: (2,32) @ (32,chunk).
            logits = jnp.dot(w3, h2, preferred_element_type=jnp.float32) + b3

            # 2-class softmax with a single exp: exp(l_max - m) == 1 exactly, so
            # only exp(l_min - l_max) is needed; select per lane by (l0 >= l1).
            l0 = logits[0:1, :]
            l1 = logits[1:2, :]
            m = jnp.maximum(l0, l1)
            mn = jnp.minimum(l0, l1)
            e = jnp.exp(mn - m)                                   # (1, chunk)
            inv = pl.reciprocal(1.0 + e, approx=False)            # exact: 1e-5 tol
            p_hi = inv
            p_lo = e * inv
            sel = l0 >= l1
            p0 = jnp.where(sel, p_hi, p_lo)
            p1 = jnp.where(sel, p_lo, p_hi)

            # Single lane-dense store of the whole (2, chunk) block.
            o_ref[:, pl.ds(start, chunk)] = jnp.concatenate([p0, p1], axis=0)

    return kernel


@functools.partial(jax.jit, static_argnames=("tile_b",))
def model_forward(x, params, *, tile_b=2048):
    """x: (B, 2) float32. Returns (B, 2) softmax probabilities (PyTorch layout)."""
    w1, b1, w2, b2, w3, b3 = params            # (in, out) weights, (1, out) biases
    B = x.shape[0]

    # Lane-dense batch tile (multiple of 128), default 2048 lanes.
    Bp0 = _round_up(B, LANE)
    tb = max(LANE, (min(tile_b, Bp0) // LANE) * LANE)
    # v7x megacore: keep >=2 grid steps when the batch allows it so the
    # "parallel" batch axis shards across both TensorCores.
    if Bp0 >= 2 * LANE:
        tb = min(tb, _round_up(Bp0 // 2, LANE))
    n_tiles = pl.cdiv(Bp0, tb)
    Bp = n_tiles * tb
    chunk = _pick_chunk(tb)

    # Transposed, zero-padded activations: batch on lanes. Under jit the
    # pad+transpose fuses into a single XLA copy (layout plumbing only).
    x_t = jnp.pad(x, ((0, Bp - B), (0, 0))).T                 # (2, Bp)

    # Weights as (out, in) so the kernel computes W @ x directly.
    w1_t, b1_t = w1.T, b1.reshape(32, 1)
    w2_t, b2_t = w2.T, b2.reshape(32, 1)
    w3_t, b3_t = w3.T, b3.reshape(2, 1)

    # Weights/biases resident in VMEM across the whole batch grid.
    resident = lambda a: pl.BlockSpec(a.shape, lambda i: (0, 0))

    flops = 2 * Bp * (2 * 32 + 32 * 32 + 32 * 2)
    bytes_accessed = 4 * (2 * Bp * 2                           # x in + probs out
                          + 2 * 32 + 32 + 32 * 32 + 32 + 32 * 2 + 2)
    cost = pl.CostEstimate(flops=flops, transcendentals=Bp,
                           bytes_accessed=bytes_accessed)

    kernel = _make_kernel(tb, chunk)

    out_t = pl.pallas_call(
        kernel,
        out_shape=jax.ShapeDtypeStruct((2, Bp), jnp.float32),
        grid_spec=pltpu.PrefetchScalarGridSpec(
            num_scalar_prefetch=0,
            grid=(n_tiles,),
            in_specs=[
                pl.BlockSpec((2, tb), lambda i: (0, i)),      # x batch tile
                resident(w1_t), resident(b1_t),
                resident(w2_t), resident(b2_t),
                resident(w3_t), resident(b3_t),
            ],
            out_specs=pl.BlockSpec((2, tb), lambda i: (0, i)),
        ),
        compiler_params=pltpu.CompilerParams(
            dimension_semantics=("parallel",),                # megacore-shard batch axis
            vmem_limit_bytes=32 * 1024 * 1024,                # far above resident set
        ),
        cost_estimate=cost,
    )(x_t, w1_t, b1_t, w2_t, b2_t, w3_t, b3_t)

    return out_t.T[:B, :]                                     # back to (B, 2)


def init_params(key):
    # Deterministic init mimicking nn.Linear's uniform(-1/sqrt(fan_in), 1/sqrt(fan_in)).
    ks = jax.random.split(key, 6)

    def lin(kw, kb, fan_in, fan_out):
        bound = 1.0 / jnp.sqrt(fan_in)
        w = jax.random.uniform(kw, (fan_in, fan_out), jnp.float32, -bound, bound)
        b = jax.random.uniform(kb, (1, fan_out), jnp.float32, -bound, bound)
        return w, b

    w1, b1 = lin(ks[0], ks[1], 2, 32)
    w2, b2 = lin(ks[2], ks[3], 32, 32)
    w3, b3 = lin(ks[4], ks[5], 32, 2)
    return (w1, b1, w2, b2, w3, b3)


def reference_forward(x, params):
    w1, b1, w2, b2, w3, b3 = params
    h = jnp.maximum(x @ w1 + b1, 0.0)
    h = jnp.maximum(h @ w2 + b2, 0.0)
    logits = h @ w3 + b3
    return jax.nn.softmax(logits, axis=1)


if __name__ == "__main__":
    key = jax.random.PRNGKey(0)
    k_x, k_p, k_x2, k_x3 = jax.random.split(key, 4)

    params = init_params(k_p)

    # Small shape consistent with the module: batch=8, in_features=2.
    x = jax.random.normal(k_x, (8, 2), jnp.float32)
    out = jax.block_until_ready(model_forward(x, params))
    ref = reference_forward(x, params)
    assert out.shape == (8, 2)
    assert jnp.allclose(out, ref, atol=1e-5, rtol=1e-5), "mismatch vs JAX reference (B=8)"
    assert jnp.allclose(jnp.sum(out, axis=1), 1.0, atol=1e-5), "softmax rows must sum to 1"

    # Exercise the multi-tile batch grid (3 tiles of 128 lanes) + padded tail.
    x2 = jax.random.normal(k_x2, (300, 2), jnp.float32)
    out2 = jax.block_until_ready(model_forward(x2, params, tile_b=128))
    ref2 = reference_forward(x2, params)
    assert jnp.allclose(out2, ref2, atol=1e-5, rtol=1e-5), "mismatch vs JAX reference (B=300)"

    # Default large tile: 2 grid steps (megacore-friendly) and a multi-chunk inner loop.
    x3 = jax.random.normal(k_x3, (2500, 2), jnp.float32)
    out3 = jax.block_until_ready(model_forward(x3, params))
    ref3 = reference_forward(x3, params)
    assert jnp.allclose(out3, ref3, atol=1e-5, rtol=1e-5), "mismatch vs JAX reference (B=2500)"

    print("KERNEL_OK")
</pallas_src>

<mosaic_0001>
module attributes {stable_mosaic.version = 11 : i64} {
  func.func @kernel(%arg0: i32, %arg1: memref<2x128xf32, #tpu.memory_space<vmem>>, %arg2: memref<32x2xf32, #tpu.memory_space<vmem>>, %arg3: memref<32x1xf32, #tpu.memory_space<vmem>>, %arg4: memref<32x32xf32, #tpu.memory_space<vmem>>, %arg5: memref<32x1xf32, #tpu.memory_space<vmem>>, %arg6: memref<2x32xf32, #tpu.memory_space<vmem>>, %arg7: memref<2x1xf32, #tpu.memory_space<vmem>>, %arg8: memref<2x128xf32, #tpu.memory_space<vmem>>) attributes {dimension_semantics = [#tpu.dimension_semantics<parallel>], iteration_bounds = array<i64: 1>, scalar_prefetch = 0 : i64, scratch_operands = 0 : i64, tpu.core_type = #tpu.core_type<tc>, window_params = [{transform_indices = @transform_0, window_bounds = array<i64: 2, 128>}, {pipeline_mode = #tpu.pipeline_mode<synchronous>, transform_indices = @transform_1, window_bounds = array<i64: 32, 2>}, {pipeline_mode = #tpu.pipeline_mode<synchronous>, transform_indices = @transform_2, window_bounds = array<i64: 32, 1>}, {pipeline_mode = #tpu.pipeline_mode<synchronous>, transform_indices = @transform_3, window_bounds = array<i64: 32, 32>}, {pipeline_mode = #tpu.pipeline_mode<synchronous>, transform_indices = @transform_4, window_bounds = array<i64: 32, 1>}, {pipeline_mode = #tpu.pipeline_mode<synchronous>, transform_indices = @transform_5, window_bounds = array<i64: 2, 32>}, {pipeline_mode = #tpu.pipeline_mode<synchronous>, transform_indices = @transform_6, window_bounds = array<i64: 2, 1>}, {transform_indices = @transform_7, window_bounds = array<i64: 2, 128>}]} {
    %c0 = arith.constant 0 : index
    %c0_0 = arith.constant 0 : index
    %0 = vector.load %arg2[%c0, %c0_0] : memref<32x2xf32, #tpu.memory_space<vmem>>, vector<32x1xf32>
    %c0_1 = arith.constant 0 : index
    %c1 = arith.constant 1 : index
    %1 = vector.load %arg2[%c0_1, %c1] : memref<32x2xf32, #tpu.memory_space<vmem>>, vector<32x1xf32>
    %c0_2 = arith.constant 0 : index
    %c0_3 = arith.constant 0 : index
    %2 = vector.load %arg3[%c0_2, %c0_3] : memref<32x1xf32, #tpu.memory_space<vmem>>, vector<32x1xf32>
    %c0_4 = arith.constant 0 : index
    %c0_5 = arith.constant 0 : index
    %3 = vector.load %arg4[%c0_4, %c0_5] : memref<32x32xf32, #tpu.memory_space<vmem>>, vector<32x32xf32>
    %c0_6 = arith.constant 0 : index
    %c0_7 = arith.constant 0 : index
    %4 = vector.load %arg5[%c0_6, %c0_7] : memref<32x1xf32, #tpu.memory_space<vmem>>, vector<32x1xf32>
    %c0_8 = arith.constant 0 : index
    %c0_9 = arith.constant 0 : index
    %5 = vector.load %arg6[%c0_8, %c0_9] : memref<2x32xf32, #tpu.memory_space<vmem>>, vector<2x32xf32>
    %c0_10 = arith.constant 0 : index
    %c0_11 = arith.constant 0 : index
    %6 = vector.load %arg7[%c0_10, %c0_11] : memref<2x1xf32, #tpu.memory_space<vmem>>, vector<2x1xf32>
    %c0_12 = arith.constant 0 : index
    %c0_13 = arith.constant 0 : index
    %7 = vector.load %arg1[%c0_12, %c0_13] : memref<2x128xf32, #tpu.memory_space<vmem>>, vector<2x128xf32>
    %8 = vector.extract_strided_slice %7 {offsets = [0, 0], sizes = [1, 128], strides = [1, 1]} : vector<2x128xf32> to vector<1x128xf32>
    %9 = vector.broadcast %0 : vector<32x1xf32> to vector<32x128xf32>
    %10 = vector.broadcast %8 : vector<1x128xf32> to vector<32x128xf32>
    %11 = arith.mulf %9, %10 : vector<32x128xf32>
    %12 = vector.extract_strided_slice %7 {offsets = [1, 0], sizes = [1, 128], strides = [1, 1]} : vector<2x128xf32> to vector<1x128xf32>
    %13 = vector.broadcast %1 : vector<32x1xf32> to vector<32x128xf32>
    %14 = vector.broadcast %12 : vector<1x128xf32> to vector<32x128xf32>
    %15 = arith.mulf %13, %14 : vector<32x128xf32>
    %16 = arith.addf %11, %15 : vector<32x128xf32>
    %17 = vector.broadcast %2 : vector<32x1xf32> to vector<32x128xf32>
    %18 = arith.addf %16, %17 : vector<32x128xf32>
    %cst = arith.constant 0.000000e+00 : f32
    %19 = vector.broadcast %cst : f32 to vector<32x128xf32>
    %20 = arith.maximumf %18, %19 : vector<32x128xf32>
    %cst_14 = arith.constant dense<0.000000e+00> : vector<32x128xf32>
    %21 = tpu.matmul %3, %20, %cst_14 {dimension_numbers = #tpu.dot_dimension_numbers<[1], [0], [0], [1], [0, 0, 1, 1], [], []>} : vector<32x32xf32>, vector<32x128xf32>, vector<32x128xf32> -> vector<32x128xf32>
    %22 = vector.broadcast %4 : vector<32x1xf32> to vector<32x128xf32>
    %23 = arith.addf %21, %22 : vector<32x128xf32>
    %cst_15 = arith.constant 0.000000e+00 : f32
    %24 = vector.broadcast %cst_15 : f32 to vector<32x128xf32>
    %25 = arith.maximumf %23, %24 : vector<32x128xf32>
    %cst_16 = arith.constant dense<0.000000e+00> : vector<2x128xf32>
    %26 = tpu.matmul %5, %25, %cst_16 {dimension_numbers = #tpu.dot_dimension_numbers<[1], [0], [0], [1], [0, 0, 1, 1], [], []>} : vector<2x32xf32>, vector<32x128xf32>, vector<2x128xf32> -> vector<2x128xf32>
    %27 = vector.broadcast %6 : vector<2x1xf32> to vector<2x128xf32>
    %28 = arith.addf %26, %27 : vector<2x128xf32>
    %29 = vector.extract_strided_slice %28 {offsets = [0, 0], sizes = [1, 128], strides = [1, 1]} : vector<2x128xf32> to vector<1x128xf32>
    %30 = vector.extract_strided_slice %28 {offsets = [1, 0], sizes = [1, 128], strides = [1, 1]} : vector<2x128xf32> to vector<1x128xf32>
    %31 = arith.maximumf %29, %30 : vector<1x128xf32>
    %32 = arith.minimumf %29, %30 : vector<1x128xf32>
    %33 = arith.subf %32, %31 : vector<1x128xf32>
    %34 = math.exp %33 : vector<1x128xf32>
    %cst_17 = arith.constant 1.000000e+00 : f32
    %35 = vector.broadcast %cst_17 : f32 to vector<1x128xf32>
    %36 = arith.addf %35, %34 : vector<1x128xf32>
    %37 = tpu.reciprocal %36 : vector<1x128xf32> -> vector<1x128xf32>
    %38 = arith.mulf %34, %37 : vector<1x128xf32>
    %39 = arith.cmpf oge, %29, %30 : vector<1x128xf32>
    %40 = arith.select %39, %37, %38 : vector<1x128xi1>, vector<1x128xf32>
    %41 = arith.select %39, %38, %37 : vector<1x128xi1>, vector<1x128xf32>
    %42 = tpu.concatenate %40, %41 in 0 : vector<1x128xf32>, vector<1x128xf32> -> vector<2x128xf32>
    %c0_18 = arith.constant 0 : index
    %c0_19 = arith.constant 0 : index
    %43 = vector.load %arg8[%c0_18, %c0_19] : memref<2x128xf32, #tpu.memory_space<vmem>>, vector<2x128xf32>
    tpu.vector_store %arg8[%c0_18, %c0_19], %42 {strides = array<i32>} : memref<2x128xf32, #tpu.memory_space<vmem>>, vector<2x128xf32>,
    return
  }
  func.func @transform_0(%arg0: i32) -> (i32, i32) {
    %c0_i32 = arith.constant 0 : i32
    %c0_i32_0 = arith.constant 0 : i32
    return %c0_i32, %arg0 : i32, i32
  }
  func.func @transform_1(%arg0: i32) -> (i32, i32) {
    %c0_i32 = arith.constant 0 : i32
    %c0_i32_0 = arith.constant 0 : i32
    %c0_i32_1 = arith.constant 0 : i32
    return %c0_i32, %c0_i32_0 : i32, i32
  }
  func.func @transform_2(%arg0: i32) -> (i32, i32) {
    %c0_i32 = arith.constant 0 : i32
    %c0_i32_0 = arith.constant 0 : i32
    %c0_i32_1 = arith.constant 0 : i32
    return %c0_i32, %c0_i32_0 : i32, i32
  }
  func.func @transform_3(%arg0: i32) -> (i32, i32) {
    %c0_i32 = arith.constant 0 : i32
    %c0_i32_0 = arith.constant 0 : i32
    %c0_i32_1 = arith.constant 0 : i32
    return %c0_i32, %c0_i32_0 : i32, i32
  }
  func.func @transform_4(%arg0: i32) -> (i32, i32) {
    %c0_i32 = arith.constant 0 : i32
    %c0_i32_0 = arith.constant 0 : i32
    %c0_i32_1 = arith.constant 0 : i32
    return %c0_i32, %c0_i32_0 : i32, i32
  }
  func.func @transform_5(%arg0: i32) -> (i32, i32) {
    %c0_i32 = arith.constant 0 : i32
    %c0_i32_0 = arith.constant 0 : i32
    %c0_i32_1 = arith.constant 0 : i32
    return %c0_i32, %c0_i32_0 : i32, i32
  }
  func.func @transform_6(%arg0: i32) -> (i32, i32) {
    %c0_i32 = arith.constant 0 : i32
    %c0_i32_0 = arith.constant 0 : i32
    %c0_i32_1 = arith.constant 0 : i32
    return %c0_i32, %c0_i32_0 : i32, i32
  }
  func.func @transform_7(%arg0: i32) -> (i32, i32) {
    %c0_i32 = arith.constant 0 : i32
    %c0_i32_0 = arith.constant 0 : i32
    return %c0_i32, %arg0 : i32, i32
  }
}

</mosaic_0001>

<bundles_post_ra>
// kernel: model_forward.1
= control target key start
LH: loop header
LB: loop body
LE: loop exit
PB: predicated region body
PF: predicated region fallthrough
CT: control target
= control target key end

     0   :  { %v461_v2 = vmov 1   ;;  %s581_s0 = inlined_call_operand.vmem [shape: f32[2,128], index: 0, kind: input, shape index: {}]   ;;  %s582_s1 = inlined_call_operand.vmem [shape: f32[32,2], index: 1, kind: input, shape index: {}]   ;;  %s583_s2 = inlined_call_operand.vmem [shape: f32[32,1], index: 2, kind: input, shape index: {}]   ;;  %s584_s3 = inlined_call_operand.vmem [shape: f32[32,32], index: 3, kind: input, shape index: {}]   ;;  %s585_s4 = inlined_call_operand.vmem [shape: f32[32,1], index: 4, kind: input, shape index: {}]   ;;  %s586_s5 = inlined_call_operand.vmem [shape: f32[2,32], index: 5, kind: input, shape index: {}]   ;;  %s587_s6 = inlined_call_operand.vmem [shape: f32[2,1], index: 6, kind: input, shape index: {}]   ;;  %s588_s7 = inlined_call_operand.hbm [shape: f32[2,128], index: 7, kind: output, shape index: {}]  }
   0x1   :  { %v29_v0 = vld [vmem:[%s582_s1 + $0x10] sm:$0xff]  ;;  %v27_v1 = vld [vmem:[%s582_s1] sm:$0xff]  ;;  %429 = vset.pattern.permute.xlu0 %v461_v2  ;;  %427 = vset.pattern.permute.xlu1 %v461_v2  ;;  %v28_v3 = vld [vmem:[%s582_s1 + $0x8] sm:$0xff] }
   0x2   :  { %83 = vperm.xlu0 %429, %v29_v0   ;;  %75 = vperm.xlu1 %427, %v27_v1  }
   0x3   :  { %12 = vsyncpa [#allocation3], 0  ;;  %v462_v4 = vmov 0   ;;  %v30_v5 = vld [vmem:[%s582_s1 + $0x18] sm:$0xff]  ;;  %v32_v6 = vld [vmem:[%s583_s2 + $0x8] sm:$0xff]  ;;  %vm150_vm0 = vcmask 261120   ;;  %v66_v16 = vlaneseq }
   0x4   :  { %v31_v7 = vld [vmem:[%s583_s2] sm:$0xff]  ;;  %v33_v9 = vld [vmem:[%s583_s2 + $0x10] sm:$0xff]  ;;  %v34_v11 = vld [vmem:[%s583_s2 + $0x18] sm:$0xff]  ;;  %v463_v60 = vmov 0.0|0.0   ;;  %vm464_vm1 = vmmov 0   ;;  %v465_v61 = vmov 0.0  }
   0x5   :  { %v39_v8 = vld [vmem:[%s585_s4] sm:$0xff]  ;;  %v41_v10 = vld [vmem:[%s585_s4 + $0x10] sm:$0xff]  ;;  %v40_v13 = vld [vmem:[%s585_s4 + $0x8] sm:$0xff]  ;;  %v67_v19 = vshrl.u32 %v66_v16, 7  ;;  %415 = vmatprep.subr.bf16.mxu1 %v463_v60  ;;  %404 = vmatprep.mubr.msk.f32.mxu1 %vm464_vm1, %v465_v61  ;;  %s466_s10 = smov [#allocation2]   ;;  %vm347_vm3 = vcmask 1040384  }
   0x6   :  { %430 = vset.pattern.permute.xlu0 %v462_v4  ;;  %79 = vperm.xlu1 %427, %v28_v3   ;;  %v44_v12 = vld [vmem:[%s587_s6] sm:$0x3]  ;;  %v42_v14 = vld [vmem:[%s585_s4 + $0x18] sm:$0xff]  ;;  %v36_v57 = vld [vmem:[%s584_s3 + $0x8] sm:$0xff] }
   0x7   :  { %48 = vperm.xlu0 %430, %v27_v1   ;;  %v35_v15 = vld [vmem:[%s584_s3] sm:$0xff]  ;;  %v68_v22 = vsub.s32 0, %v67_v19  ;;  %v92_v23 = vsub.s32 1, %v67_v19  ;;  %v37_v58 = vld [vmem:[%s584_s3 + $0x10] sm:$0xff]  ;;  %v38_v59 = vld [vmem:[%s584_s3 + $0x18] sm:$0xff] }
   0x8   :  { %390 = vmatprep.mubr.msk.f32.mxu0 %vm150_vm0, %v35_v15  ;;  %v45_v24 = vld [vmem:[%s581_s0] sm:$0x3] }
   0x9   :  { %v69_v27 = vrot.slane %v45_v24, %v68_v22  ;;  %v93_v28 = vrot.slane %v45_v24, %v92_v23  ;;  %v43_v16 = vld [vmem:[%s586_s5] sm:$0x3]  ;;  %s356_s5 = sshll.u32 %s466_s10, 4  ;;  %s357_s5 = int_to_ptr.vmem [resolvable:$true] %s356_s5 }
   0xa   :  { %428 = vset.pattern.permute.xlu1 %v462_v4  ;;  %s437_s11 = scalar_lea.vmem %s357_s5, 32  ;;  %p442_p1 = scmp.lt.s32.totalorder %s357_s5, %s357_s5 }
   0xb   :  { %53 = vperm.xlu0 %430, %v28_v3   ;;  %63 = vperm.xlu1 %428, %v30_v5   ;;  %p438_p0 = scmp.ne.s32.totalorder %s357_s5, %s437_s11  ;;  %p443_p2 = scmp.lt.s32.totalorder %s437_s11, %s437_s11 }
   0xd   :  { %p444_p3 = por %p443_p2, %p442_p1 }
   0xf   :  { %58 = vperm.xlu0 %430, %v29_v0   ;;  %431 = vset.pattern.permute.xlu1 %v461_v2  ;;  %p445_p4 = pnand %p444_p3, %p438_p0 }
  0x10   :  { %87 = vperm.xlu1 %431, %v30_v5  }
  0x13   :  { %109 = vperm.xlu0 %430, %v32_v6  }
  0x14   :  { %432 = vset.pattern.permute.xlu1 %v462_v4 }
  0x15   :  { %104 = vperm.xlu1 %432, %v31_v7  }
  0x17   :  { %132 = vperm.xlu0 %430, %v39_v8  }
  0x19   :  { %114 = vperm.xlu1 %432, %v33_v9  }
  0x1b   :  { %142 = vperm.xlu0 %430, %v41_v10  }
  0x1d   :  { %119 = vperm.xlu1 %432, %v34_v11  }
  0x1f   :  { %254 = vperm.xlu0 %430, %v44_v12  }
  0x21   :  { %137 = vperm.xlu1 %432, %v40_v13  }
  0x25   :  { %147 = vperm.xlu1 %432, %v42_v14  }
  0x81   :  { %v76_v17 = vpop.permute.xlu1 %75  ;;  %v84_v18 = vpop.permute.xlu0 %83 }
  0x82   :  { %v94_v34 = vmul.f32 %v93_v28, %v76_v17  ;;  %v96_v42 = vmul.f32 %v93_v28, %v84_v18 }
  0x85   :  { %v80_v20 = vpop.permute.xlu1 %79 }
  0x86   :  { %v49_v21 = vpop.permute.xlu0 %48  ;;  %v95_v31 = vmul.f32 %v93_v28, %v80_v20 }
  0x87   :  { %v70_v32 = vmul.f32 %v69_v27, %v49_v21 }
  0x89   :  { %v98_v38 = vadd.f32 %v94_v34, %v70_v32 }
  0x8a   :  { %v54_v25 = vpop.permute.xlu0 %53  ;;  %v64_v26 = vpop.permute.xlu1 %63 }
  0x8b   :  { %v71_v29 = vmul.f32 %v69_v27, %v54_v25  ;;  %v73_v47 = vmul.f32 %v69_v27, %v64_v26 }
  0x8d   :  { %v99_v35 = vadd.f32 %v95_v31, %v71_v29 }
  0x8e   :  { %v59_v30 = vpop.permute.xlu0 %58 }
  0x8f   :  { %v88_v33 = vpop.permute.xlu1 %87  ;;  %v72_v40 = vmul.f32 %v69_v27, %v59_v30 }
  0x90   :  { %v97_v43 = vmul.f32 %v93_v28, %v88_v33 }
  0x91   :  { %v100_v48 = vadd.f32 %v96_v42, %v72_v40 }
  0x92   :  { %v110_v36 = vpop.permute.xlu0 %109  ;;  %v101_v51 = vadd.f32 %v97_v43, %v73_v47 }
  0x93   :  { %v123_v37 = vadd.f32 %v110_v36, %v99_v35 }
  0x94   :  { %v105_v39 = vpop.permute.xlu1 %104 }
  0x95   :  { %v122_v41 = vadd.f32 %v105_v39, %v98_v38  ;;  %v127_v44 = vmax.f32 %v123_v37, 0.0 }
  0x96   :  { %v133_v63 = vpop.permute.xlu0 %132 }
  0x97   :  { %v126_v45 = vmax.f32 %v122_v41, 0.0 }
  0x98   :  { %v115_v46 = vpop.permute.xlu1 %114 }
  0x99   :  { %v407_v49 = vpack.c.bf16 %v127_v44, %v126_v45  ;;  %v124_v50 = vadd.f32 %v115_v46, %v100_v48 }
  0x9a   :  { %v143_v8 = vpop.permute.xlu0 %142 }
  0x9b   :  { %408 = vmatprep.subr.bf16.mxu0 %v407_v49  ;;  %v128_v54 = vmax.f32 %v124_v50, 0.0 }
  0x9c   :  { %410 = vmatpush3.bf16.msra.mxu0 %v407_v49  ;;  %v120_v52 = vpop.permute.xlu1 %119 }
  0x9d   :  { %v125_v53 = vadd.f32 %v120_v52, %v101_v51 }
  0x9e   :  { %v255_v17 = vpop.permute.xlu0 %254 }
  0x9f   :  { %v129_v55 = vmax.f32 %v125_v53, 0.0 }
  0xa0   :  { %v138_v62 = vpop.permute.xlu1 %137 }
  0xa1   :  { %v411_v56 = vpack.c.bf16 %v129_v55, %v128_v54 }
  0xa3   :  { %412 = vmatprep.subr.bf16.mxu0 %v411_v56 }
  0xa4   :  { %414 = vmatpush3.bf16.msra.mxu0 %v411_v56  ;;  %v148_v5 = vpop.permute.xlu1 %147 }
  0xa7   :  { %391 = vmatmul.mubr.msk.f32.vlgmr.msra.gmra.mrb[0].mxu0 %vm150_vm0, %v36_v57 }
  0xa8   :  { %393 = vmatprep.mubr.msk.f32.mxu0 %vm150_vm0, %v37_v58 }
  0xab   :  { %394 = vmatmul.mubr.msk.f32.gmra.mrb[2].mxu0 %vm150_vm0, %v38_v59 }
 0x17a   :  { %v392_v0 = vpop.f32.mrb[0].mxu0 }
 0x17b   :  { %v235_v1 = vadd.f32 %v392_v0, %v138_v62  ;;  %v229_v2 = vpop.f32.mrb[1].mxu0 }
 0x17c   :  { %v230_v3 = vadd.f32 %v229_v2, %v133_v63 }
 0x17d   :  { %v249_v4 = vmax.f32 %v235_v1, 0.0 }
 0x17e   :  { %v248_v6 = vmax.f32 %v230_v3, 0.0  ;;  %v395_v7 = vpop.f32.mrb[2].mxu0 }
 0x17f   :  { %v245_v9 = vadd.f32 %v395_v7, %v148_v5  ;;  %v239_v10 = vpop.f32.mrb[3].mxu0 }
 0x180   :  { %v240_v11 = vadd.f32 %v239_v10, %v143_v8  ;;  %v416_v12 = vpack.c.bf16 %v249_v4, %v248_v6 }
 0x181   :  { %v251_v13 = vmax.f32 %v245_v9, 0.0 }
 0x182   :  { %v250_v14 = vmax.f32 %v240_v11, 0.0  ;;  %417 = vmatpush3.bf16.msra.mxu1 %v416_v12 }
 0x183   :  { %418 = vmatprep.subr.bf16.mxu1 %v463_v60 }
 0x184   :  { %v419_v15 = vpack.c.bf16 %v251_v13, %v250_v14 }
 0x186   :  { %420 = vmatpush3.bf16.msra.mxu1 %v419_v15 }
 0x189   :  { %405 = vmatmul.mubr.msk.f32.vlgmr.msra.gmra.mrb[0].mxu1 %vm150_vm0, %v43_v16 }
 0x25c   :  { %v326_v18 = vpop.f32.mrb[0].mxu1 }
 0x25d   :  { %v327_v19 = vadd.f32 %v326_v18, %v255_v17  ;;  %v406_v20 = vpop.f32.mrb[1].mxu1 }
 0x25f   :  { %v331_v21 = vrot.slane %v327_v19, 1 }
 0x261   :  { %v333_v22 = vmax.f32 %v327_v19, %v331_v21  ;;  %v334_v23 = vmin.f32 %v327_v19, %v331_v21  ;;  %vm341_vm2 = vcmp.ge.f32.partialorder %v327_v19, %v331_v21 }
 0x263   :  { %v335_v24 = vsub.f32 %v334_v23, %v333_v22 }
 0x265   :  { %v336_v25 = vmul.f32 1.442695, %v335_v24 }
 0x267   :  { %433 = vpow2.f32 %v336_v25 }
 0x271   :  { %v434_v26 = vpop.eup %433 }
 0x272   :  { %v338_v27 = vadd.f32 1.0, %v434_v26 }
 0x274   :  { %435 = vrcp.f32 %v338_v27 }
 0x27e   :  { %v436_v28 = vpop.eup %435 }
 0x27f   :  { %v340_v29 = vmul.f32 %v436_v28, %v434_v26 }
 0x281   :  { %v343_v30 = vsel %vm341_vm2, %v340_v29, %v436_v28  ;;  %v342_v32 = vsel %vm341_vm2, %v436_v28, %v340_v29 }
 0x282   :  { %v345_v31 = vrot.slane %v343_v30, 7 }
 0x284   :  { %v348_v33 = vsel %vm347_vm3, %v342_v32, %v345_v31 }
 0x285   :  { %349 = vst [vmem:[#allocation2] sm:$0x3] %v348_v33 }
 0x286   :  { %448 = shalt.err (!%p445_p4)
}
 0x287   :  { %s449_s14 = scalar_lea.hbm %s588_s7, 32 }
 0x288   :  { %p450_p5 = scmp.ne.s32.totalorder %s588_s7, %s449_s14  ;;  %p453_p6 = scmp.lt.u32.totalorder %s449_s14, %s588_s7 }
 0x28a   :  { %p455_p7 = pnand %p453_p6, %p450_p5 }
 0x28c   :  { %458 = shalt.err (!%p455_p7)
}
 0x28d   :  { %359 = dma.vmem_to_hbm [thread:$0]  %s357_s5, 32, %s588_s7, [#allocation3]  }
 0x28e   :  { %459 = dma.done.wait [#allocation3], 32  }
 0x28f   :  { %460 = vsyncadd [#allocation3], 4294967264 }
 0x290   :  { %363 = vsyncpa [#allocation3], 1 }

</bundles_post_ra>
